<compile_context>
chip_gen: v5e
topology: v5e:2x2
jax: 0.10.0
libtpu: 0.0.40
codegen_flags: <defaults>
</compile_context>

<pallas_src>
import functools

import jax
import jax.numpy as jnp
from jax.experimental import pallas as pl
from jax.experimental.pallas import tpu as pltpu

_LANE = 128
_SUBLANE = 8


def _round_up(n, m):
    return (n + m - 1) // m * m


def _attention_bottleneck_kernel(x1_ref, x2_ref, p_ref, out_ref, *,
                                 bn, d1, d2, lane, tm,
                                 off_w1, off_w2, off_wa, off_wo,
                                 off_bin, off_ba, off_bo):
    x1 = x1_ref[...]                                  # [tm, d1]
    x2 = x2_ref[...]                                  # [tm, d2]

    # Static, sublane-aligned carves of the packed parameter slab.
    w1 = p_ref[off_w1:off_w1 + d1, :]                 # [d1, lane] W1^T in cols 0..bn-1
    w2 = p_ref[off_w2:off_w2 + d2, :]                 # [d2, lane] W2^T in cols bn..2bn-1
    wa = p_ref[off_wa:off_wa + lane, :]               # [lane, lane] Wa^T (zero-padded)
    wo = p_ref[off_wo:off_wo + bn, :]                 # [bn,   lane] Wo^T (zero-padded)

    if tm == _SUBLANE:
        # Biases are replicated across 8 sublanes -> full-tile vadd, no broadcast.
        b_in = p_ref[off_bin:off_bin + _SUBLANE, :]
        b_a = p_ref[off_ba:off_ba + _SUBLANE, :]
        b_o = p_ref[off_bo:off_bo + _SUBLANE, :]
    else:
        b_in = p_ref[off_bin:off_bin + 1, :]          # [1, lane] -> broadcast over rows
        b_a = p_ref[off_ba:off_ba + 1, :]
        b_o = p_ref[off_bo:off_bo + 1, :]

    # h = [relu(x1 @ W1^T + b1) | relu(x2 @ W2^T + b2) | 0..]  -- two MXU pushes,
    # each weight block is zero outside its own lane span so the sum is exact.
    acc = jnp.dot(x1, w1, preferred_element_type=jnp.float32)
    acc = acc + jnp.dot(x2, w2, preferred_element_type=jnp.float32)
    h = jnp.maximum(acc + b_in, 0.0)                  # [tm, lane]

    # attention_weights = sigmoid(cat(h1, h2) @ Wa^T + ba)
    logits = jnp.dot(h, wa, preferred_element_type=jnp.float32) + b_a
    aw = jax.nn.sigmoid(logits[:, :bn])               # [tm, bn]

    h1 = h[:, :bn]
    h2 = h[:, bn:2 * bn]
    fused = h2 + aw * (h1 - h2)                       # == aw*h1 + (1-aw)*h2

    # out = fused @ Wo^T + bo   (lane-dense [tm, 128] unmasked store).
    out_ref[...] = (
        jnp.dot(fused, wo, preferred_element_type=jnp.float32) + b_o
    ).astype(out_ref.dtype)


def pack_params(params):
    """One-time (parameter-load-time) packing of PyTorch-convention weights
    into a single lane-dense f32 slab.  NOT on the per-call hot path."""
    w1, b1 = params["w1"], params["b1"]               # [bn, d1], [bn]
    w2, b2 = params["w2"], params["b2"]               # [bn, d2], [bn]
    wa, ba = params["wa"], params["ba"]               # [bn, 2bn], [bn]
    wo, bo = params["wo"], params["bo"]               # [d1+d2, bn], [d1+d2]

    bn, d1 = w1.shape
    d2 = w2.shape[1]
    out_dim = d1 + d2

    lane = max(_round_up(2 * bn, _LANE), _round_up(out_dim, _LANE), _LANE)
    d1_pad = _round_up(d1, _SUBLANE)
    d2_pad = _round_up(d2, _SUBLANE)
    bn_pad = _round_up(bn, _SUBLANE)

    f32 = jnp.float32
    w1_blk = jnp.zeros((d1_pad, lane), f32).at[:d1, :bn].set(w1.T.astype(f32))
    w2_blk = jnp.zeros((d2_pad, lane), f32).at[:d2, bn:2 * bn].set(w2.T.astype(f32))
    wa_blk = jnp.zeros((lane, lane), f32).at[:2 * bn, :bn].set(wa.T.astype(f32))
    wo_blk = jnp.zeros((bn_pad, lane), f32).at[:bn, :out_dim].set(wo.T.astype(f32))

    # Each bias replicated across all 8 sublanes of its own aligned tile.
    bin_blk = jnp.zeros((_SUBLANE, lane), f32)
    bin_blk = bin_blk.at[:, :bn].set(jnp.broadcast_to(b1.astype(f32), (_SUBLANE, bn)))
    bin_blk = bin_blk.at[:, bn:2 * bn].set(jnp.broadcast_to(b2.astype(f32), (_SUBLANE, bn)))
    ba_blk = jnp.zeros((_SUBLANE, lane), f32)
    ba_blk = ba_blk.at[:, :bn].set(jnp.broadcast_to(ba.astype(f32), (_SUBLANE, bn)))
    bo_blk = jnp.zeros((_SUBLANE, lane), f32)
    bo_blk = bo_blk.at[:, :out_dim].set(jnp.broadcast_to(bo.astype(f32), (_SUBLANE, out_dim)))

    slab = jnp.concatenate(
        [w1_blk, w2_blk, wa_blk, wo_blk, bin_blk, ba_blk, bo_blk], axis=0)

    off_w1 = 0
    off_w2 = off_w1 + d1_pad
    off_wa = off_w2 + d2_pad
    off_wo = off_wa + lane
    off_bin = off_wo + bn_pad
    off_ba = off_bin + _SUBLANE
    off_bo = off_ba + _SUBLANE
    rows = off_bo + _SUBLANE

    meta = dict(
        bn=bn, d1=d1, d2=d2, out_dim=out_dim, lane=lane, rows=rows,
        off_w1=off_w1, off_w2=off_w2, off_wa=off_wa, off_wo=off_wo,
        off_bin=off_bin, off_ba=off_ba, off_bo=off_bo,
    )
    return slab, meta


def make_attention_bottleneck(meta, dtype=jnp.float32, block_b=None,
                              return_padded=False):
    """Builds a jitted forward fn taking (x1, x2, packed_slab)."""
    bn, d1, d2 = meta["bn"], meta["d1"], meta["d2"]
    out_dim, lane, rows = meta["out_dim"], meta["lane"], meta["rows"]

    def fwd(x1, x2, slab):
        B = x1.shape[0]
        # Batch tile: multiple of 8 sublanes, capped at 256 rows (good MXU fill
        # once the kernel is no longer overhead-bound; tiny slab keeps VMEM
        # usage far below the 32 MiB default scoped limit on all chips).
        tm = block_b if block_b is not None else min(_round_up(B, _SUBLANE), 256)
        tm = _round_up(tm, _SUBLANE)
        Bp = _round_up(B, tm)
        if Bp != B:
            x1 = jnp.pad(x1, ((0, Bp - B), (0, 0)))
            x2 = jnp.pad(x2, ((0, Bp - B), (0, 0)))

        kernel = functools.partial(
            _attention_bottleneck_kernel,
            bn=bn, d1=d1, d2=d2, lane=lane, tm=tm,
            off_w1=meta["off_w1"], off_w2=meta["off_w2"],
            off_wa=meta["off_wa"], off_wo=meta["off_wo"],
            off_bin=meta["off_bin"], off_ba=meta["off_ba"],
            off_bo=meta["off_bo"])

        out = pl.pallas_call(
            kernel,
            out_shape=jax.ShapeDtypeStruct((Bp, lane), dtype),
            grid=(Bp // tm,),
            in_specs=[
                pl.BlockSpec((tm, d1), lambda i: (i, 0)),
                pl.BlockSpec((tm, d2), lambda i: (i, 0)),
                # Constant slab: same block for every step -> DMA'd once,
                # stays VMEM-resident across the whole grid.
                pl.BlockSpec((rows, lane), lambda i: (0, 0)),
            ],
            out_specs=pl.BlockSpec((tm, lane), lambda i: (i, 0)),
            compiler_params=pltpu.CompilerParams(
                dimension_semantics=("parallel",)),
        )(x1.astype(jnp.float32), x2.astype(jnp.float32), slab)

        if return_padded:
            return out          # lane-dense [Bp, 128]; cols >= out_dim are bias-pad
        return out[:B, :out_dim].astype(dtype)

    return jax.jit(fwd)


def _reference(x1, x2, p):
    """Pure-JAX reference matching the PyTorch forward exactly."""
    h1 = jax.nn.relu(x1 @ p["w1"].T + p["b1"])
    h2 = jax.nn.relu(x2 @ p["w2"].T + p["b2"])
    combined = jnp.concatenate([h1, h2], axis=1)
    aw = jax.nn.sigmoid(combined @ p["wa"].T + p["ba"])
    fused = aw * h1 + (1.0 - aw) * h2
    return fused @ p["wo"].T + p["bo"]


if __name__ == "__main__":
    B = 8
    input_dim1 = 32
    input_dim2 = 48
    bottleneck = 64

    key = jax.random.PRNGKey(0)
    keys = jax.random.split(key, 12)

    def init(k, shape, fan_in):
        bound = 1.0 / jnp.sqrt(fan_in)
        return jax.random.uniform(k, shape, jnp.float32, -bound, bound)

    params = {
        "w1": init(keys[0], (bottleneck, input_dim1), input_dim1),
        "b1": init(keys[1], (bottleneck,), input_dim1),
        "w2": init(keys[2], (bottleneck, input_dim2), input_dim2),
        "b2": init(keys[3], (bottleneck,), input_dim2),
        "wa": init(keys[4], (bottleneck, bottleneck * 2), bottleneck * 2),
        "ba": init(keys[5], (bottleneck,), bottleneck * 2),
        "wo": init(keys[6], (input_dim1 + input_dim2, bottleneck), bottleneck),
        "bo": init(keys[7], (input_dim1 + input_dim2,), bottleneck),
    }

    x1 = jax.random.normal(keys[8], (B, input_dim1), jnp.float32)
    x2 = jax.random.normal(keys[9], (B, input_dim2), jnp.float32)

    # One-time packing (load time), then the fast per-call path.
    slab, meta = pack_params(params)
    slab = jax.block_until_ready(slab)

    # 1) Small single-tile call (B=8, grid=(1,)).
    fwd = make_attention_bottleneck(meta)
    out = jax.block_until_ready(fwd(x1, x2, slab))
    ref = _reference(x1, x2, params)
    assert out.shape == (B, input_dim1 + input_dim2)
    max_err = jnp.max(jnp.abs(out - ref))
    assert jnp.allclose(out, ref, atol=1e-5, rtol=1e-5), f"max abs err {max_err}"

    # 2) Batched call exercising the grid (4 batch tiles, slab DMA'd once,
    #    "parallel" axis available to v7x's second TensorCore).
    Bb = 32
    xb1 = jax.random.normal(keys[10], (Bb, input_dim1), jnp.float32)
    xb2 = jax.random.normal(keys[11], (Bb, input_dim2), jnp.float32)
    fwd_batched = make_attention_bottleneck(meta, block_b=8)
    outb = jax.block_until_ready(fwd_batched(xb1, xb2, slab))
    refb = _reference(xb1, xb2, params)
    assert outb.shape == (Bb, input_dim1 + input_dim2)
    max_err_b = jnp.max(jnp.abs(outb - refb))
    assert jnp.allclose(outb, refb, atol=1e-5, rtol=1e-5), f"max abs err {max_err_b}"

    print("KERNEL_OK")
</pallas_src>

<mosaic_0001>
module attributes {stable_mosaic.version = 11 : i64} {
  func.func @_attention_bottleneck_kernel(%arg0: i32, %arg1: memref<8x32xf32, #tpu.memory_space<vmem>>, %arg2: memref<8x48xf32, #tpu.memory_space<vmem>>, %arg3: memref<296x128xf32, #tpu.memory_space<vmem>>, %arg4: memref<8x128xf32, #tpu.memory_space<vmem>>) attributes {dimension_semantics = [#tpu.dimension_semantics<parallel>], iteration_bounds = array<i64: 1>, scalar_prefetch = 0 : i64, scratch_operands = 0 : i64, tpu.core_type = #tpu.core_type<tc>, window_params = [{transform_indices = @transform_0, window_bounds = array<i64: 8, 32>}, {transform_indices = @transform_1, window_bounds = array<i64: 8, 48>}, {pipeline_mode = #tpu.pipeline_mode<synchronous>, transform_indices = @transform_2, window_bounds = array<i64: 296, 128>}, {transform_indices = @transform_3, window_bounds = array<i64: 8, 128>}]} {
    %c0 = arith.constant 0 : index
    %c0_0 = arith.constant 0 : index
    %0 = vector.load %arg1[%c0, %c0_0] : memref<8x32xf32, #tpu.memory_space<vmem>>, vector<8x32xf32>
    %c0_1 = arith.constant 0 : index
    %c0_2 = arith.constant 0 : index
    %1 = vector.load %arg2[%c0_1, %c0_2] : memref<8x48xf32, #tpu.memory_space<vmem>>, vector<8x48xf32>
    %c0_3 = arith.constant 0 : index
    %c0_4 = arith.constant 0 : index
    %2 = vector.load %arg3[%c0_3, %c0_4] : memref<296x128xf32, #tpu.memory_space<vmem>>, vector<32x128xf32>
    %c32 = arith.constant 32 : index
    %c0_5 = arith.constant 0 : index
    %3 = vector.load %arg3[%c32, %c0_5] : memref<296x128xf32, #tpu.memory_space<vmem>>, vector<48x128xf32>
    %c80 = arith.constant 80 : index
    %c0_6 = arith.constant 0 : index
    %4 = vector.load %arg3[%c80, %c0_6] : memref<296x128xf32, #tpu.memory_space<vmem>>, vector<128x128xf32>
    %c208 = arith.constant 208 : index
    %c0_7 = arith.constant 0 : index
    %5 = vector.load %arg3[%c208, %c0_7] : memref<296x128xf32, #tpu.memory_space<vmem>>, vector<64x128xf32>
    %c272 = arith.constant 272 : index
    %c0_8 = arith.constant 0 : index
    %6 = vector.load %arg3[%c272, %c0_8] : memref<296x128xf32, #tpu.memory_space<vmem>>, vector<8x128xf32>
    %c280 = arith.constant 280 : index
    %c0_9 = arith.constant 0 : index
    %7 = vector.load %arg3[%c280, %c0_9] : memref<296x128xf32, #tpu.memory_space<vmem>>, vector<8x128xf32>
    %c288 = arith.constant 288 : index
    %c0_10 = arith.constant 0 : index
    %8 = vector.load %arg3[%c288, %c0_10] : memref<296x128xf32, #tpu.memory_space<vmem>>, vector<8x128xf32>
    %cst = arith.constant dense<0.000000e+00> : vector<8x128xf32>
    %9 = tpu.matmul %0, %2, %cst {dimension_numbers = #tpu.dot_dimension_numbers<[1], [0], [0], [1], [0, 0, 1, 1], [], []>} : vector<8x32xf32>, vector<32x128xf32>, vector<8x128xf32> -> vector<8x128xf32>
    %cst_11 = arith.constant dense<0.000000e+00> : vector<8x128xf32>
    %10 = tpu.matmul %1, %3, %cst_11 {dimension_numbers = #tpu.dot_dimension_numbers<[1], [0], [0], [1], [0, 0, 1, 1], [], []>} : vector<8x48xf32>, vector<48x128xf32>, vector<8x128xf32> -> vector<8x128xf32>
    %11 = arith.addf %9, %10 : vector<8x128xf32>
    %12 = arith.addf %11, %6 : vector<8x128xf32>
    %cst_12 = arith.constant 0.000000e+00 : f32
    %13 = vector.broadcast %cst_12 : f32 to vector<8x128xf32>
    %14 = arith.maximumf %12, %13 : vector<8x128xf32>
    %cst_13 = arith.constant dense<0.000000e+00> : vector<8x128xf32>
    %15 = tpu.matmul %14, %4, %cst_13 {dimension_numbers = #tpu.dot_dimension_numbers<[1], [0], [0], [1], [0, 0, 1, 1], [], []>} : vector<8x128xf32>, vector<128x128xf32>, vector<8x128xf32> -> vector<8x128xf32>
    %16 = arith.addf %15, %7 : vector<8x128xf32>
    %17 = vector.extract_strided_slice %16 {offsets = [0, 0], sizes = [8, 64], strides = [1, 1]} : vector<8x128xf32> to vector<8x64xf32>
    %18 = arith.negf %17 : vector<8x64xf32>
    %19 = math.exp %18 : vector<8x64xf32>
    %cst_14 = arith.constant 1.000000e+00 : f32
    %20 = vector.broadcast %cst_14 : f32 to vector<8x64xf32>
    %21 = arith.addf %20, %19 : vector<8x64xf32>
    %22 = arith.divf %20, %21 : vector<8x64xf32>
    %23 = vector.extract_strided_slice %14 {offsets = [0, 0], sizes = [8, 64], strides = [1, 1]} : vector<8x128xf32> to vector<8x64xf32>
    %24 = vector.extract_strided_slice %14 {offsets = [0, 64], sizes = [8, 64], strides = [1, 1]} : vector<8x128xf32> to vector<8x64xf32>
    %25 = arith.subf %23, %24 : vector<8x64xf32>
    %26 = arith.mulf %22, %25 : vector<8x64xf32>
    %27 = arith.addf %24, %26 : vector<8x64xf32>
    %cst_15 = arith.constant dense<0.000000e+00> : vector<8x128xf32>
    %28 = tpu.matmul %27, %5, %cst_15 {dimension_numbers = #tpu.dot_dimension_numbers<[1], [0], [0], [1], [0, 0, 1, 1], [], []>} : vector<8x64xf32>, vector<64x128xf32>, vector<8x128xf32> -> vector<8x128xf32>
    %29 = arith.addf %28, %8 : vector<8x128xf32>
    %c0_16 = arith.constant 0 : index
    %c0_17 = arith.constant 0 : index
    %30 = vector.load %arg4[%c0_16, %c0_17] : memref<8x128xf32, #tpu.memory_space<vmem>>, vector<8x128xf32>
    tpu.vector_store %arg4[%c0_16, %c0_17], %29 {strides = array<i32>} : memref<8x128xf32, #tpu.memory_space<vmem>>, vector<8x128xf32>,
    return
  }
  func.func @transform_0(%arg0: i32) -> (i32, i32) {
    %c0_i32 = arith.constant 0 : i32
    %c0_i32_0 = arith.constant 0 : i32
    return %arg0, %c0_i32 : i32, i32
  }
  func.func @transform_1(%arg0: i32) -> (i32, i32) {
    %c0_i32 = arith.constant 0 : i32
    %c0_i32_0 = arith.constant 0 : i32
    return %arg0, %c0_i32 : i32, i32
  }
  func.func @transform_2(%arg0: i32) -> (i32, i32) {
    %c0_i32 = arith.constant 0 : i32
    %c0_i32_0 = arith.constant 0 : i32
    %c0_i32_1 = arith.constant 0 : i32
    return %c0_i32, %c0_i32_0 : i32, i32
  }
  func.func @transform_3(%arg0: i32) -> (i32, i32) {
    %c0_i32 = arith.constant 0 : i32
    %c0_i32_0 = arith.constant 0 : i32
    return %arg0, %c0_i32 : i32, i32
  }
}

</mosaic_0001>

<bundles_post_ra>
// kernel: fwd.1
= control target key start
LH: loop header
LB: loop body
LE: loop exit
PB: predicated region body
PF: predicated region fallthrough
CT: control target
= control target key end

     0   :  { %8 = vsyncpa [#allocation3], 0  ;;  %s401_s0 = inlined_call_operand.hbm [shape: f32[8,32], index: 0, kind: input, shape index: {}]   ;;  %s402_s1 = inlined_call_operand.hbm [shape: f32[8,48], index: 1, kind: input, shape index: {}]   ;;  %s403_s2 = inlined_call_operand.hbm [shape: f32[296,128], index: 2, kind: input, shape index: {}]   ;;  %s404_s3 = inlined_call_operand.hbm [shape: f32[8,128], index: 3, kind: output, shape index: {}]  }
   0x1   :  { %9 = vsyncpa [#allocation6], 0  ;;  %s27_s14 = sshll.u32 %s402_s1, 4  ;;  %s28_s14 = int_to_ptr.hbm [resolvable:$true] %s27_s14 }
   0x2   :  { %10 = vsyncpa [#allocation4], 0  ;;  %s359_s15 = smov [#allocation5]   ;;  %s16_s19 = sshll.u32 %s401_s0, 4  ;;  %s17_s19 = int_to_ptr.hbm [resolvable:$true] %s16_s19 }
   0x3   :  { %s29_s16 = sshll.u32 %s359_s15, 4  ;;  %s360_s20 = smov [#allocation2]   ;;  %s30_s16 = int_to_ptr.vmem [resolvable:$true] %s29_s16 }
   0x4   :  { %32 = dma.hbm_to_vmem [thread:$0]  %s28_s14, 128, %s30_s16, [#allocation6]  }
   0x5   :  { %s18_s21 = sshll.u32 %s360_s20, 4  ;;  %s37_s24 = sshll.u32 %s403_s2, 4  ;;  %s19_s21 = int_to_ptr.vmem [resolvable:$true] %s18_s21  ;;  %s38_s24 = int_to_ptr.hbm [resolvable:$true] %s37_s24 }
   0x6   :  { %21 = dma.hbm_to_vmem [thread:$0]  %s17_s19, 128, %s19_s21, [#allocation3]  }
   0x7   :  { %s361_s1 = smov [#allocation7]   ;;  %s362_s26 = smov 128  }
   0x8   :  { %s39_s25 = sshll.u32 %s361_s1, 4  ;;  %s363_s27 = smov 8   ;;  %s40_s25 = int_to_ptr.vmem [resolvable:$true] %s39_s25 }
   0x9   :  { %45 = dma.hbm_to_vmem [thread:$0]  %s38_s24, 4736, %s40_s25, [#allocation6], %s362_s26, %s362_s26, %s363_s27  }
   0xa   :  { %353 = dma.done.wait [#allocation3], 128  }
   0xb   :  { %354 = vsyncadd [#allocation3], 4294967168 }
   0xc   :  { %355 = dma.done.wait [#allocation6], 4864  }
   0xd   :  { %356 = vsyncadd [#allocation6], 4294962432  ;;  %v69_v0 = vld [vmem:[#allocation7 + $0x48] sm:$0xff]  ;;  %v68_v1 = vld [vmem:[#allocation7 + $0x40] sm:$0xff]  ;;  %vm121_vm0 = vcmask 261120   ;;  %vm97_vm1 = vcmask 392192  }
   0xe   :  { %111 = vmatpush.msra.mxu0 %v69_v0  ;;  %v63_v2 = vld [vmem:[#allocation7 + $0x18] sm:$0xff]  ;;  %v62_v3 = vld [vmem:[#allocation7 + $0x10] sm:$0xff]  ;;  %v61_v5 = vld [vmem:[#allocation7 + $0x8] sm:$0xff]  ;;  %s364_s0 = smov 64   ;;  %vm200_vm6 = vcmask 523264   ;;  %s365_s2 = smov [#allocation8]  }
   0xf   :  { %v67_v4 = vld [vmem:[#allocation7 + $0x38] sm:$0xff]  ;;  %137 = vmatpush.msra.mxu1 %v63_v2  ;;  %v66_v6 = vld [vmem:[#allocation7 + $0x30] sm:$0xff]  ;;  %v85_v7 = vld [vmem:[#allocation7 + $0xc8] sm:$0xff]  ;;  %s229_s28 = sshll.u32 %s365_s2, 4  ;;  %s231_s4 = sshll.u32 %s404_s3, 4  ;;  %s230_s28 = int_to_ptr.vmem [resolvable:$true] %s229_s28  ;;  %s232_s4 = int_to_ptr.hbm [resolvable:$true] %s231_s4 }
  0x10   :  { %112 = vmatpush.msra.mxu0 %v68_v1  ;;  %v84_v8 = vld [vmem:[#allocation7 + $0xc0] sm:$0xff]  ;;  %147 = vmatpush.msra.mxu2 %v85_v7  ;;  %v65_v10 = vld [vmem:[#allocation7 + $0x28] sm:$0xff]  ;;  %v58_v11 = vld [vmem:[#allocation2] sm:$0xff] }
  0x11   :  { %138 = vmatpush.msra.mxu1 %v62_v3  ;;  %v60_v9 = vld [vmem:[#allocation7] sm:$0xff]  ;;  %v83_v12 = vld [vmem:[#allocation7 + $0xb8] sm:$0xff]  ;;  %v82_v15 = vld [vmem:[#allocation7 + $0xb0] sm:$0xff] }
  0x12   :  { %113 = vmatpush.msra.mxu0 %v67_v4  ;;  %148 = vmatpush.msra.mxu2 %v84_v8  ;;  %v64_v13 = vld [vmem:[#allocation7 + $0x20] sm:$0xff]  ;;  %v59_v14 = vld [vmem:[#allocation5] sm:$0xff]  ;;  %v81_v16 = vld [vmem:[#allocation7 + $0xa8] sm:$0xff] }
  0x13   :  { %139 = vmatpush.msra.mxu1 %v61_v5  ;;  %v80_v17 = vld [vmem:[#allocation7 + $0xa0] sm:$0xff]  ;;  %v79_v18 = vld [vmem:[#allocation7 + $0x98] sm:$0xff]  ;;  %v78_v19 = vld [vmem:[#allocation7 + $0x90] sm:$0xff] }
  0x14   :  { %114 = vmatpush.msra.mxu0 %v66_v6  ;;  %149 = vmatpush.msra.mxu2 %v83_v12  ;;  %v77_v20 = vld [vmem:[#allocation7 + $0x88] sm:$0xff]  ;;  %v76_v21 = vld [vmem:[#allocation7 + $0x80] sm:$0xff]  ;;  %v75_v22 = vld [vmem:[#allocation7 + $0x78] sm:$0xff] }
  0x15   :  { %140 = vmatpush.msra.mxu1 %v60_v9  ;;  %v74_v23 = vld [vmem:[#allocation7 + $0x70] sm:$0xff]  ;;  %v73_v24 = vld [vmem:[#allocation7 + $0x68] sm:$0xff]  ;;  %v72_v25 = vld [vmem:[#allocation7 + $0x60] sm:$0xff] }
  0x16   :  { %115 = vmatpush.msra.mxu0 %v65_v10  ;;  %243 = vmatmul.msk.f32.vlgmr.msra.gmra.mxu1 %vm121_vm0, %v58_v11  ;;  %v71_v26 = vld [vmem:[#allocation7 + $0x58] sm:$0xff]  ;;  %v70_v27 = vld [vmem:[#allocation7 + $0x50] sm:$0xff]  ;;  %v93_v53 = vld [vmem:[#allocation7 + $0x108] sm:$0xff] }
  0x17   :  { %150 = vmatpush.msra.mxu2 %v82_v15  ;;  %v94_v30 = vld [vmem:[#allocation7 + $0x110] sm:$0xff]  ;;  %v95_v34 = vld [vmem:[#allocation7 + $0x118] sm:$0xff]  ;;  %v92_v54 = vld [vmem:[#allocation7 + $0x100] sm:$0xff]  ;;  %211 = vmatpush.msra.mxu3 %v93_v53 }
  0x18   :  { %116 = vmatpush.msra.mxu0 %v64_v13  ;;  %v91_v55 = vld [vmem:[#allocation7 + $0xf8] sm:$0xff]  ;;  %v90_v56 = vld [vmem:[#allocation7 + $0xf0] sm:$0xff]  ;;  %v89_v57 = vld [vmem:[#allocation7 + $0xe8] sm:$0xff] }
  0x19   :  { %242 = vmatmul.msk.f32.vlgmr.msra.gmra.mxu0 %vm97_vm1, %v59_v14  ;;  %151 = vmatpush.msra.mxu2 %v81_v16  ;;  %v88_v58 = vld [vmem:[#allocation7 + $0xe0] sm:$0xff]  ;;  %v87_v59 = vld [vmem:[#allocation7 + $0xd8] sm:$0xff]  ;;  %v86_v60 = vld [vmem:[#allocation7 + $0xd0] sm:$0xff] }
  0x1a   :  { %212 = vmatpush.msra.mxu3 %v92_v54  ;;  %v96_v0 = vld [vmem:[#allocation7 + $0x120] sm:$0xff] }
  0x1b   :  { %152 = vmatpush.msra.mxu2 %v80_v17 }
  0x1c   :  { %213 = vmatpush.msra.mxu3 %v91_v55 }
  0x1d   :  { %153 = vmatpush.msra.mxu2 %v79_v18 }
  0x1e   :  { %214 = vmatpush.msra.mxu3 %v90_v56 }
  0x1f   :  { %154 = vmatpush.msra.mxu2 %v78_v19 }
  0x20   :  { %215 = vmatpush.msra.mxu3 %v89_v57 }
  0x21   :  { %155 = vmatpush.msra.mxu2 %v77_v20 }
  0x22   :  { %216 = vmatpush.msra.mxu3 %v88_v58 }
  0x23   :  { %156 = vmatpush.msra.mxu2 %v76_v21 }
  0x24   :  { %217 = vmatpush.msra.mxu3 %v87_v59 }
  0x25   :  { %157 = vmatpush.msra.mxu2 %v75_v22 }
  0x26   :  { %218 = vmatpush.msra.mxu3 %v86_v60 }
  0x27   :  { %158 = vmatpush.msra.mxu2 %v74_v23 }
  0x29   :  { %159 = vmatpush.msra.mxu2 %v73_v24 }
  0x2b   :  { %160 = vmatpush.msra.mxu2 %v72_v25 }
  0x2d   :  { %161 = vmatpush.msra.mxu2 %v71_v26 }
  0x2f   :  { %162 = vmatpush.msra.mxu2 %v70_v27 }
  0x93   :  { %v142_v28 = vpop.f32.mrf.mxu1 }
  0x96   :  { %v118_v29 = vpop.f32.mrf.mxu0 }
  0x97   :  { %v143_v31 = vadd.f32 %v142_v28, %v118_v29 }
  0x99   :  { %v145_v32 = vadd.f32 %v143_v31, %v94_v30 }
  0x9b   :  { %v146_v33 = vmax.f32 %v145_v32, 0.0 }
  0x9d   :  { %187 = vrot.lane.b32.xlu0 %v146_v33, %s364_s0  ;;  %163 = vmatmul.f32.vlgmr.msra.gmra.mxu2 %v146_v33 }
 0x10f   :  { %v188_v46 = vpop.permute.xlu0 %187 }
 0x110   :  { %v190_v49 = vsub.f32 %v146_v33, %v188_v46 }
 0x120   :  { %v164_v35 = vpop.f32.mrf.mxu2 }
 0x121   :  { %v165_v36 = vadd.f32 %v164_v35, %v95_v34 }
 0x123   :  { %v244_v37 = vmul.f32 -1.442695, %v165_v36 }
 0x125   :  { %253 = vpow2.f32 %v244_v37 }
 0x12b   :  { %v254_v38 = vpop.eup %253 }
 0x12c   :  { %v170_v39 = vadd.f32 1.0, %v254_v38 }
 0x12e   :  { %255 = vrcp.f32 %v170_v39  ;;  %v182_v43 = vand.u32 2147483648, %v170_v39  ;;  %v180_v45 = vand.u32 2147483647, %v170_v39  ;;  %vm176_vm3 = vweird.f32 %v170_v39 }
 0x130   :  { %v183_v48 = vor.u32 1.1754944e-38, %v182_v43  ;;  %vm181_vm5 = vcmp.eq.f32.partialorder %v180_v45, 8.507059e+37 }
 0x134   :  { %v256_v40 = vpop.eup %255 }
 0x135   :  { %v172_v41 = vmul.f32 %v256_v40, %v170_v39  ;;  %vm177_vm2 = vweird.f32 %v256_v40 }
 0x136   :  { %vm178_vm4 = vmor %vm176_vm3, %vm177_vm2 }
 0x137   :  { %v173_v42 = vsub.f32 1.0, %v172_v41 }
 0x139   :  { %v174_v44 = vmul.f32 %v256_v40, %v173_v42 }
 0x13b   :  { %v175_v47 = vadd.f32 %v256_v40, %v174_v44 }
 0x13d   :  { %v179_v50 = vsel %vm178_vm4, %v256_v40, %v175_v47 }
 0x13e   :  { %v184_v51 = vsel %vm181_vm5, %v183_v48, %v179_v50 }
 0x13f   :  { %v191_v52 = vmul.f32 %v190_v49, %v184_v51 }
 0x141   :  { %193 = vrot.lane.b32.xlu0 %v191_v52, %s364_s0 }
 0x1b3   :  { %v194_v61 = vpop.permute.xlu0 %193 }
 0x1b4   :  { %v196_v62 = vadd.f32 %v194_v61, %v146_v33 }
 0x1b6   :  { %198 = vrot.lane.b32.xlu1 %v196_v62, %s364_s0 }
 0x228   :  { %v199_v63 = vpop.permute.xlu1 %198 }
 0x229   :  { %245 = vmatmul.msk.f32.vlgmr.msra.gmra.mxu3 %vm200_vm6, %v199_v63 }
 0x2ac   :  { %v220_v1 = vpop.f32.mrf.mxu3 }
 0x2ad   :  { %v221_v2 = vadd.f32 %v220_v1, %v96_v0 }
 0x2af   :  { %223 = vst [vmem:[#allocation8] sm:$0xff] %v221_v2 }
 0x2b0   :  { %234 = dma.vmem_to_hbm [thread:$0]  %s230_s28, 128, %s232_s4, [#allocation4]  }
 0x2b1   :  { %357 = dma.done.wait [#allocation4], 128  }
 0x2b2   :  { %358 = vsyncadd [#allocation4], 4294967168 }
 0x2b3   :  { %239 = vsyncpa [#allocation3], 1 }
 0x2b4   :  { %240 = vsyncpa [#allocation6], 1 }
 0x2b5   :  { %241 = vsyncpa [#allocation4], 1 }

</bundles_post_ra>
